<compile_context>
chip_gen: v5e
topology: v5e:2x2
jax: 0.10.0
libtpu: 0.0.40
codegen_flags: <defaults>
</compile_context>

<pallas_src>
import math

import jax
import jax.numpy as jnp
from jax.experimental import pallas as pl
from jax.experimental.pallas import tpu as pltpu

HIDDEN = 32
HEADS = 8
DH = HIDDEN // HEADS          # per-head dim
BATCH = 2
SEQ = 8
K_PACK = 128                  # padded contraction dim of the fused projection

# Linear-layer stacking order in the packed weight/bias tensors.
W_Q, W_K, W_V, W_MERGE, W_QI, W_VI, W_QG, W_VG = range(8)


def aoa_kernel(x_ref, w_ref, wmv_ref, mkb_ref, mv_ref, o_ref):
    H, S, B, NH = HIDDEN, SEQ, BATCH, HEADS
    BS = B * S

    # ---- fused projections + q-path I/G + biases: one (16,128)@(128,160) ----
    y = jnp.dot(x_ref[...], w_ref[...], preferred_element_type=jnp.float32)
    qp = y[:, 0:H]               # q @ W_Q / sqrt(DH) + b_Q / sqrt(DH)
    kp = y[:, H:2 * H]           # k @ W_K + b_K
    vp = y[:, 2 * H:3 * H]       # v @ W_V + b_V
    q_ig = y[:, 3 * H:5 * H]     # q @ [W_QI|W_QG] + folded I/G biases

    mask_k = mkb_ref[0:H, :]         # (32, 128) head block-diagonal (K side)
    bmask = mkb_ref[H:H + BS, :]     # (16, 128) same-batch mask for scores
    mask_v = mv_ref[...]             # (128, 32) head block-diagonal (V side)

    # ---- batch+head block-diagonal attention, single pass -------------------
    # Score-column layout: c = h*BS + (b*S + j).
    # k_blk[h*DH+d, h*BS + b*S + j] = kp[b*S+j, h*DH+d]
    k_blk = jnp.concatenate([kp.T] * NH, axis=1) * mask_k          # (32, 128)
    s = jnp.dot(qp, k_blk, preferred_element_type=jnp.float32)     # (16, 128)

    # Global row max is a per-row constant -> segmented softmax stays exact
    # after masking; exp(-m) cancels between num and den.
    m = jnp.max(s, axis=-1, keepdims=True)
    e = jnp.exp(s - m) * bmask                                     # (16, 128)

    # v_blk[h*BS + b*S + j, h*DH+d] = vp[b*S+j, h*DH+d]
    v_blk = jnp.concatenate([vp] * NH, axis=0) * mask_v            # (128, 32)
    num = jnp.dot(e, v_blk, preferred_element_type=jnp.float32)    # (16, 32)
    den = jnp.dot(e, mask_v, preferred_element_type=jnp.float32)   # (16, 32) per-head sums
    atted = num * pl.reciprocal(den, approx=False)

    # ---- merge + I/G (linear_merge folded into wmv at pack time) ------------
    yig = q_ig + jnp.dot(atted, wmv_ref[...], preferred_element_type=jnp.float32)
    I = yig[:, 0:H]
    G = jax.nn.sigmoid(yig[:, H:2 * H])
    o_ref[...] = (I * G).astype(o_ref.dtype)


def pack_params(W, b):
    """One-time packing of the 8 stacked Linears (y = x @ W[i] + b[i]).

    Returns:
      w_aug (128, 160): lane-wise block-diagonal projection weight —
        rows 0:96  = diag(W_Q/sqrt(DH), W_K, W_V) plus [W_QI|W_QG] in cols 96:160,
        row  96    = bias row (rides on the constant-1 lane of x_aug),
        rows 97:127 zero padding (K padded to an aligned 128).
      w_mv (32, 64): W_MERGE folded into the V-side I/G weights.
    """
    H = HIDDEN
    scale = 1.0 / math.sqrt(DH)

    w_q_ig = jnp.concatenate([W[W_QI], W[W_QG]], axis=1)        # (32, 64)
    w_v_ig = jnp.concatenate([W[W_VI], W[W_VG]], axis=1)        # (32, 64)
    w_mv = W[W_MERGE] @ w_v_ig                                  # (32, 64)
    b_ig = (jnp.concatenate([b[W_QI], b[W_QG]])
            + jnp.concatenate([b[W_VI], b[W_VG]])
            + b[W_MERGE] @ w_v_ig)                              # (64,)

    w_aug = jnp.zeros((K_PACK, 5 * H), dtype=jnp.float32)
    w_aug = w_aug.at[0:H, 0:H].set(W[W_Q] * scale)
    w_aug = w_aug.at[H:2 * H, H:2 * H].set(W[W_K])
    w_aug = w_aug.at[2 * H:3 * H, 2 * H:3 * H].set(W[W_V])
    w_aug = w_aug.at[0:H, 3 * H:5 * H].set(w_q_ig)
    b_row = jnp.concatenate([b[W_Q] * scale, b[W_K], b[W_V], b_ig])   # (160,)
    w_aug = w_aug.at[3 * H, :].set(b_row)
    return w_aug, w_mv


def make_masks():
    """Constant block-diagonal / batch masks for the fused attention pass."""
    H, S, B, NH = HIDDEN, SEQ, BATCH, HEADS
    BS = B * S
    col = jnp.arange(NH * BS)                                   # 128 score columns
    # K-side head mask: weight-row head (r // DH) == column head (c // BS).
    mask_k = ((jnp.arange(H)[:, None] // DH) == (col[None, :] // BS)).astype(jnp.float32)
    # Same-batch mask on scores: query-row batch == key-column batch.
    bmask = ((jnp.arange(BS)[:, None] // S) == ((col[None, :] % BS) // S)).astype(jnp.float32)
    # V-side head mask: key-row head (r // BS) == value-column head (c // DH).
    mask_v = ((col[:, None] // BS) == (jnp.arange(H)[None, :] // DH)).astype(jnp.float32)
    mask_kb = jnp.concatenate([mask_k, bmask], axis=0)          # (48, 128)
    return mask_kb, mask_v                                      # (48,128), (128,32)


def aoa_forward(q, k, v, W, b):
    B, S, H = q.shape
    assert (B, S, H) == (BATCH, SEQ, HIDDEN)
    BS = B * S
    w_aug, w_mv = pack_params(W, b)
    mask_kb, mask_v = make_masks()

    # x_aug = [q | k | v | 1 | 0-pad]: one matmul yields Q/K/V + q-path IG + biases.
    x_aug = jnp.zeros((BS, K_PACK), q.dtype)
    x_aug = x_aug.at[:, 0:H].set(q.reshape(BS, H))
    x_aug = x_aug.at[:, H:2 * H].set(k.reshape(BS, H))
    x_aug = x_aug.at[:, 2 * H:3 * H].set(v.reshape(BS, H))
    x_aug = x_aug.at[:, 3 * H].set(1.0)

    vmem = pl.BlockSpec(memory_space=pltpu.MemorySpace.VMEM)
    out2d = pl.pallas_call(
        aoa_kernel,
        out_shape=jax.ShapeDtypeStruct((BS, H), q.dtype),
        in_specs=[vmem] * 5,
        out_specs=vmem,
    )(x_aug, w_aug, w_mv, mask_kb, mask_v)
    return out2d.reshape(B, S, H)


def reference(q, k, v, W, b):
    """Pure-JAX reference matching the PyTorch forward (eval mode)."""
    def lin(x, i):
        return x @ W[i] + b[i]

    B, S, H = q.shape
    qp, kp, vp = lin(q, W_Q), lin(k, W_K), lin(v, W_V)

    def split(x):
        return x.reshape(B, S, HEADS, DH).transpose(0, 2, 1, 3)   # (B, h, S, DH)

    qh, kh, vh = split(qp), split(kp), split(vp)
    scores = jnp.einsum('bhqd,bhkd->bhqk', qh, kh) / math.sqrt(DH)
    p = jax.nn.softmax(scores, axis=-1)
    atted = jnp.einsum('bhqk,bhkd->bhqd', p, vh).transpose(0, 2, 1, 3).reshape(B, S, H)
    Vv = lin(atted, W_MERGE)
    I = lin(q, W_QI) + lin(Vv, W_VI)
    G = jax.nn.sigmoid(lin(q, W_QG) + lin(Vv, W_VG))
    return I * G


if __name__ == "__main__":
    key = jax.random.PRNGKey(0)
    k_q, k_k, k_v, k_w, k_b = jax.random.split(key, 5)

    q = jax.random.normal(k_q, (BATCH, SEQ, HIDDEN), dtype=jnp.float32)
    k = jax.random.normal(k_k, (BATCH, SEQ, HIDDEN), dtype=jnp.float32)
    v = jax.random.normal(k_v, (BATCH, SEQ, HIDDEN), dtype=jnp.float32)

    # Deterministic synthetic parameters (8 stacked Linear layers).
    W = 0.05 * jax.random.normal(k_w, (8, HIDDEN, HIDDEN), dtype=jnp.float32)
    b = 0.01 * jax.random.normal(k_b, (8, HIDDEN), dtype=jnp.float32)

    out = aoa_forward(q, k, v, W, b)
    out = jax.block_until_ready(out)

    ref = reference(q, k, v, W, b)
    assert out.shape == (BATCH, SEQ, HIDDEN)
    assert jnp.allclose(out, ref, rtol=1e-4, atol=1e-4), "mismatch vs reference"

    print("KERNEL_OK")
</pallas_src>

<mosaic_0001>
module attributes {stable_mosaic.version = 11 : i64} {
  func.func @aoa_kernel(%arg0: memref<16x128xf32, #tpu.memory_space<vmem>>, %arg1: memref<128x160xf32, #tpu.memory_space<vmem>>, %arg2: memref<32x64xf32, #tpu.memory_space<vmem>>, %arg3: memref<48x128xf32, #tpu.memory_space<vmem>>, %arg4: memref<128x32xf32, #tpu.memory_space<vmem>>, %arg5: memref<16x32xf32, #tpu.memory_space<vmem>>) attributes {dimension_semantics = [], scalar_prefetch = 0 : i64, scratch_operands = 0 : i64, tpu.core_type = #tpu.core_type<tc>} {
    %c0 = arith.constant 0 : index
    %c0_0 = arith.constant 0 : index
    %0 = vector.load %arg0[%c0, %c0_0] : memref<16x128xf32, #tpu.memory_space<vmem>>, vector<16x128xf32>
    %c0_1 = arith.constant 0 : index
    %c0_2 = arith.constant 0 : index
    %1 = vector.load %arg1[%c0_1, %c0_2] : memref<128x160xf32, #tpu.memory_space<vmem>>, vector<128x160xf32>
    %cst = arith.constant dense<0.000000e+00> : vector<16x160xf32>
    %2 = tpu.matmul %0, %1, %cst {dimension_numbers = #tpu.dot_dimension_numbers<[1], [0], [0], [1], [0, 0, 1, 1], [], []>} : vector<16x128xf32>, vector<128x160xf32>, vector<16x160xf32> -> vector<16x160xf32>
    %3 = vector.extract_strided_slice %2 {offsets = [0, 0], sizes = [16, 32], strides = [1, 1]} : vector<16x160xf32> to vector<16x32xf32>
    %4 = vector.extract_strided_slice %2 {offsets = [0, 32], sizes = [16, 32], strides = [1, 1]} : vector<16x160xf32> to vector<16x32xf32>
    %5 = vector.extract_strided_slice %2 {offsets = [0, 64], sizes = [16, 32], strides = [1, 1]} : vector<16x160xf32> to vector<16x32xf32>
    %6 = vector.extract_strided_slice %2 {offsets = [0, 96], sizes = [16, 64], strides = [1, 1]} : vector<16x160xf32> to vector<16x64xf32>
    %c0_3 = arith.constant 0 : index
    %c0_4 = arith.constant 0 : index
    %7 = vector.load %arg3[%c0_3, %c0_4] : memref<48x128xf32, #tpu.memory_space<vmem>>, vector<32x128xf32>
    %c32 = arith.constant 32 : index
    %c0_5 = arith.constant 0 : index
    %8 = vector.load %arg3[%c32, %c0_5] : memref<48x128xf32, #tpu.memory_space<vmem>>, vector<16x128xf32>
    %c0_6 = arith.constant 0 : index
    %c0_7 = arith.constant 0 : index
    %9 = vector.load %arg4[%c0_6, %c0_7] : memref<128x32xf32, #tpu.memory_space<vmem>>, vector<128x32xf32>
    %10 = tpu.transpose %4, [1, 0] : vector<16x32xf32> -> vector<32x16xf32>
    %11 = tpu.concatenate %10, %10, %10, %10, %10, %10, %10, %10 in 1 : vector<32x16xf32>, vector<32x16xf32>, vector<32x16xf32>, vector<32x16xf32>, vector<32x16xf32>, vector<32x16xf32>, vector<32x16xf32>, vector<32x16xf32> -> vector<32x128xf32>
    %12 = arith.mulf %11, %7 : vector<32x128xf32>
    %cst_8 = arith.constant dense<0.000000e+00> : vector<16x128xf32>
    %13 = tpu.matmul %3, %12, %cst_8 {dimension_numbers = #tpu.dot_dimension_numbers<[1], [0], [0], [1], [0, 0, 1, 1], [], []>} : vector<16x32xf32>, vector<32x128xf32>, vector<16x128xf32> -> vector<16x128xf32>
    %cst_9 = arith.constant dense<0xFF800000> : vector<16xf32>
    %14 = vector.multi_reduction <maximumf>, %13, %cst_9 [1] : vector<16x128xf32> to vector<16xf32>
    %15 = vector.shape_cast %14 : vector<16xf32> to vector<16x1xf32>
    %16 = vector.broadcast %15 : vector<16x1xf32> to vector<16x128xf32>
    %17 = arith.subf %13, %16 : vector<16x128xf32>
    %18 = math.exp %17 : vector<16x128xf32>
    %19 = arith.mulf %18, %8 : vector<16x128xf32>
    %20 = tpu.concatenate %5, %5, %5, %5, %5, %5, %5, %5 in 0 : vector<16x32xf32>, vector<16x32xf32>, vector<16x32xf32>, vector<16x32xf32>, vector<16x32xf32>, vector<16x32xf32>, vector<16x32xf32>, vector<16x32xf32> -> vector<128x32xf32>
    %21 = arith.mulf %20, %9 : vector<128x32xf32>
    %cst_10 = arith.constant dense<0.000000e+00> : vector<16x32xf32>
    %22 = tpu.matmul %19, %21, %cst_10 {dimension_numbers = #tpu.dot_dimension_numbers<[1], [0], [0], [1], [0, 0, 1, 1], [], []>} : vector<16x128xf32>, vector<128x32xf32>, vector<16x32xf32> -> vector<16x32xf32>
    %cst_11 = arith.constant dense<0.000000e+00> : vector<16x32xf32>
    %23 = tpu.matmul %19, %9, %cst_11 {dimension_numbers = #tpu.dot_dimension_numbers<[1], [0], [0], [1], [0, 0, 1, 1], [], []>} : vector<16x128xf32>, vector<128x32xf32>, vector<16x32xf32> -> vector<16x32xf32>
    %24 = tpu.reciprocal %23 : vector<16x32xf32> -> vector<16x32xf32>
    %25 = arith.mulf %22, %24 : vector<16x32xf32>
    %c0_12 = arith.constant 0 : index
    %c0_13 = arith.constant 0 : index
    %26 = vector.load %arg2[%c0_12, %c0_13] : memref<32x64xf32, #tpu.memory_space<vmem>>, vector<32x64xf32>
    %cst_14 = arith.constant dense<0.000000e+00> : vector<16x64xf32>
    %27 = tpu.matmul %25, %26, %cst_14 {dimension_numbers = #tpu.dot_dimension_numbers<[1], [0], [0], [1], [0, 0, 1, 1], [], []>} : vector<16x32xf32>, vector<32x64xf32>, vector<16x64xf32> -> vector<16x64xf32>
    %28 = arith.addf %6, %27 : vector<16x64xf32>
    %29 = vector.extract_strided_slice %28 {offsets = [0, 0], sizes = [16, 32], strides = [1, 1]} : vector<16x64xf32> to vector<16x32xf32>
    %30 = vector.extract_strided_slice %28 {offsets = [0, 32], sizes = [16, 32], strides = [1, 1]} : vector<16x64xf32> to vector<16x32xf32>
    %31 = arith.negf %30 : vector<16x32xf32>
    %32 = math.exp %31 : vector<16x32xf32>
    %cst_15 = arith.constant 1.000000e+00 : f32
    %33 = vector.broadcast %cst_15 : f32 to vector<16x32xf32>
    %34 = arith.addf %33, %32 : vector<16x32xf32>
    %35 = arith.divf %33, %34 : vector<16x32xf32>
    %36 = arith.mulf %29, %35 : vector<16x32xf32>
    %c0_16 = arith.constant 0 : index
    %c0_17 = arith.constant 0 : index
    %37 = vector.load %arg5[%c0_16, %c0_17] : memref<16x32xf32, #tpu.memory_space<vmem>>, vector<16x32xf32>
    tpu.vector_store %arg5[%c0_16, %c0_17], %36 {strides = array<i32>} : memref<16x32xf32, #tpu.memory_space<vmem>>, vector<16x32xf32>,
    return
  }
}

</mosaic_0001>

<bundles_post_ra>
// kernel: tpu_custom_call.1
= control target key start
LH: loop header
LB: loop body
LE: loop exit
PB: predicated region body
PF: predicated region fallthrough
CT: control target
= control target key end

     0   :  { %s1192_s0 = inlined_call_operand.vmem [shape: f32[16,128], index: 0, kind: input, shape index: {}]   ;;  %s1193_s1 = inlined_call_operand.vmem [shape: f32[128,160], index: 1, kind: input, shape index: {}]   ;;  %s1194_s2 = inlined_call_operand.vmem [shape: f32[32,64], index: 2, kind: input, shape index: {}]   ;;  %s1195_s3 = inlined_call_operand.vmem [shape: f32[48,128], index: 3, kind: input, shape index: {}]   ;;  %s1196_s4 = inlined_call_operand.vmem [shape: f32[128,32], index: 4, kind: input, shape index: {}]   ;;  %s1197_s5 = inlined_call_operand.hbm [shape: f32[16,32], index: 5, kind: output, shape index: {}]  }
   0x1   :  { %v53_v0 = vld [vmem:[%s1193_s1 + $0xf0] sm:$0xff]  ;;  %v51_v1 = vld [vmem:[%s1193_s1 + $0xe0] sm:$0xff] }
   0x2   :  { %55 = vmatpush.msra.mxu0 %v53_v0  ;;  %v49_v2 = vld [vmem:[%s1193_s1 + $0xd0] sm:$0xff]  ;;  %v47_v3 = vld [vmem:[%s1193_s1 + $0xc0] sm:$0xff] }
   0x3   :  { %v45_v4 = vld [vmem:[%s1193_s1 + $0xb0] sm:$0xff] }
   0x4   :  { %56 = vmatpush.msra.mxu0 %v51_v1 }
   0x6   :  { %57 = vmatpush.msra.mxu0 %v49_v2 }
   0x7   :  { %10 = vsyncpa [#allocation3], 0  ;;  %v43_v5 = vld [vmem:[%s1193_s1 + $0xa0] sm:$0xff]  ;;  %v41_v6 = vld [vmem:[%s1193_s1 + $0x90] sm:$0xff]  ;;  %s773_s29 = smov 96   ;;  %s775_s30 = smov 48  }
   0x8   :  { %58 = vmatpush.msra.mxu0 %v47_v3  ;;  %v39_v7 = vld [vmem:[%s1193_s1 + $0x80] sm:$0xff]  ;;  %v37_v8 = vld [vmem:[%s1193_s1 + $0x70] sm:$0xff]  ;;  %v870_v17 = vld [vmem:[%s1192_s0 + $0x8] sm:$0xff]  ;;  %s776_s8 = smov 32   ;;  %s777_s9 = smov 64   ;;  %vm251_vm0 = vcmask 130048  }
   0x9   :  { %v35_v9 = vld [vmem:[%s1193_s1 + $0x60] sm:$0xff]  ;;  %v33_v10 = vld [vmem:[%s1193_s1 + $0x50] sm:$0xff]  ;;  %v898_v27 = vld [vmem:[%s1196_s4 + $0x48] sm:$0xff]  ;;  %s778_s18 = smov 112   ;;  %s779_s19 = smov 80   ;;  %vm256_vm1 = vcmask 261120  }
   0xa   :  { %59 = vmatpush.msra.mxu0 %v45_v4  ;;  %v31_v11 = vld [vmem:[%s1193_s1 + $0x40] sm:$0xff]  ;;  %v29_v12 = vld [vmem:[%s1193_s1 + $0x30] sm:$0xff]  ;;  %v917_v29 = vld [vmem:[%s1196_s4 + $0x18] sm:$0xff]  ;;  %vm261_vm2 = vcmask 392192   ;;  %vm266_vm3 = vcmask 523264   ;;  %vm271_vm4 = vcmask 654336  }
   0xb   :  { %v27_v13 = vld [vmem:[%s1193_s1 + $0x20] sm:$0xff]  ;;  %v25_v14 = vld [vmem:[%s1193_s1 + $0x10] sm:$0xff]  ;;  %v956_v36 = vld [vmem:[%s1196_s4 + $0x58] sm:$0xff]  ;;  %vm276_vm5 = vcmask 785408   ;;  %vm281_vm6 = vcmask 916480   ;;  %s781_s21 = smov 128  }
   0xc   :  { %60 = vmatpush.msra.mxu0 %v43_v5  ;;  %v23_v15 = vld [vmem:[%s1193_s1] sm:$0xff]  ;;  %v907_v28 = vld [vmem:[%s1196_s4 + $0x30] sm:$0xff]  ;;  %v972_v42 = vld [vmem:[%s1196_s4 + $0x78] sm:$0xff]  ;;  %s782_s22 = smov 8  }
   0xd   :  { %v864_v16 = vld [vmem:[%s1192_s0] sm:$0xff]  ;;  %s774_s0 = smov 16   ;;  %v947_v32 = vld [vmem:[%s1196_s4 + $0x70] sm:$0xff]  ;;  %v982_v46 = vld [vmem:[%s1196_s4 + $0x28] sm:$0xff] }
   0xe   :  { %61 = vmatpush.msra.mxu0 %v41_v6  ;;  %v888_v26 = vld [vmem:[%s1196_s4 + $0x60] sm:$0xff]  ;;  %v987_v47 = vld [vmem:[%s1196_s4 + $0x68] sm:$0xff]  ;;  %v1000_v53 = vld [vmem:[%s1196_s4 + $0x10] sm:$0xff] }
   0xf   :  { %v926_v30 = vld [vmem:[%s1196_s4] sm:$0xff]  ;;  %v1005_v54 = vld [vmem:[%s1196_s4 + $0x50] sm:$0xff]  ;;  %v1015_v58 = vld [vmem:[%s1196_s4 + $0x38] sm:$0xff] }
  0x10   :  { %62 = vmatpush.msra.mxu0 %v39_v7  ;;  %v967_v41 = vld [vmem:[%s1196_s4 + $0x40] sm:$0xff]  ;;  %v1029_v0 = vld [vmem:[%s1196_s4 + $0x8] sm:$0xff] }
  0x11   :  { %v1022_v61 = vld [vmem:[%s1196_s4 + $0x20] sm:$0xff] }
  0x12   :  { %63 = vmatpush.msra.mxu0 %v37_v8 }
  0x14   :  { %64 = vmatpush.msra.mxu0 %v35_v9 }
  0x16   :  { %65 = vmatpush.msra.mxu0 %v33_v10 }
  0x18   :  { %66 = vmatpush.msra.mxu0 %v31_v11 }
  0x1a   :  { %67 = vmatpush.msra.mxu0 %v29_v12 }
  0x1c   :  { %68 = vmatpush.msra.mxu0 %v27_v13 }
  0x1e   :  { %69 = vmatpush.msra.mxu0 %v25_v14 }
  0x20   :  { %70 = vmatpush.msra.mxu0 %v23_v15 }
  0x21   :  { %71 = vmatmul.f32.vlgmr.msra.gmra.mxu0 %v864_v16 }
  0x29   :  { %74 = vmatmul.f32.gmra.mxu0 %v870_v17 }
  0x9e   :  { %v873_v18 = vpop.f32.mrf.mxu0 }
  0x9f   :  { %125 = vrot.lane.b32.xlu0 %v873_v18, %s773_s29 }
  0xa6   :  { %v877_v19 = vpop.f32.mrf.mxu0 }
  0xa7   :  { %127 = vrot.lane.b32.xlu0 %v877_v19, %s773_s29 }
 0x111   :  { %v126_v20 = vpop.permute.xlu0 %125 }
 0x112   :  { %131 = vxpose.xlu1.b32.start [1/2] (short) (narrow) %v126_v20, 32 }
 0x119   :  { %v128_v21 = vpop.permute.xlu0 %127 }
 0x11a   :  { %132 = vxpose.xlu1.b32.end [2/2] (short) (narrow) %v128_v21, 32 }
 0x1b6   :  { %v881_v22 = vpop.trf.xlu1 }
 0x1be   :  { %v883_v23 = vpop.trf.xlu1 }
 0x1c6   :  { %v149_v24 = vpop.trf.xlu1 }
 0x1c7   :  { %171 = vrot.lane.b32.xlu0 %v149_v24, %s774_s0 }
 0x1ce   :  { %v150_v25 = vpop.trf.xlu1 }
 0x1cf   :  { %195 = vrot.lane.b32.xlu0 %v149_v24, %s775_s30  ;;  %197 = vrot.lane.b32.xlu1 %v150_v25, %s775_s30 }
 0x1d0   :  { %173 = vrot.lane.b32.xlu2 %v150_v25, %s774_s0 }
 0x1d7   :  { %181 = vrot.lane.b32.xlu0 %v883_v23, %s776_s8  ;;  %369 = vrot.lane.b32.xlu1 %v888_v26, %s777_s9 }
 0x1d8   :  { %185 = vrot.lane.b32.xlu2 %v150_v25, %s776_s8 }
 0x1df   :  { %193 = vrot.lane.b32.xlu0 %v883_v23, %s775_s30  ;;  %363 = vrot.lane.b32.xlu1 %v898_v27, %s777_s9 }
 0x1e0   :  { %183 = vrot.lane.b32.xlu2 %v149_v24, %s776_s8 }
 0x1e7   :  { %205 = vrot.lane.b32.xlu0 %v883_v23, %s777_s9  ;;  %357 = vrot.lane.b32.xlu1 %v907_v28, %s777_s9 }
 0x1e8   :  { %169 = vrot.lane.b32.xlu2 %v883_v23, %s774_s0 }
 0x1ef   :  { %191 = vrot.lane.b32.xlu0 %v881_v22, %s775_s30  ;;  %351 = vrot.lane.b32.xlu1 %v917_v29, %s777_s9 }
 0x1f0   :  { %207 = vrot.lane.b32.xlu2 %v149_v24, %s777_s9 }
 0x1f7   :  { %243 = vrot.lane.b32.xlu0 %v149_v24, %s778_s18  ;;  %345 = vrot.lane.b32.xlu1 %v926_v30, %s777_s9 }
 0x1f8   :  { %167 = vrot.lane.b32.xlu2 %v881_v22, %s774_s0 }
 0x1ff   :  { %229 = vrot.lane.b32.xlu0 %v883_v23, %s773_s29 }
 0x200   :  { %219 = vrot.lane.b32.xlu2 %v149_v24, %s779_s19 }
 0x207   :  { %241 = vrot.lane.b32.xlu0 %v883_v23, %s778_s18 }
 0x208   :  { %179 = vrot.lane.b32.xlu2 %v881_v22, %s776_s8 }
 0x20f   :  { %209 = vrot.lane.b32.xlu0 %v150_v25, %s777_s9 }
 0x210   :  { %231 = vrot.lane.b32.xlu2 %v149_v24, %s773_s29 }
 0x217   :  { %233 = vrot.lane.b32.xlu0 %v150_v25, %s773_s29 }
 0x218   :  { %217 = vrot.lane.b32.xlu2 %v883_v23, %s779_s19 }
 0x21f   :  { %245 = vrot.lane.b32.xlu0 %v150_v25, %s778_s18 }
 0x220   :  { %203 = vrot.lane.b32.xlu2 %v881_v22, %s777_s9 }
 0x227   :  { %239 = vrot.lane.b32.xlu0 %v881_v22, %s778_s18 }
 0x228   :  { %215 = vrot.lane.b32.xlu2 %v881_v22, %s779_s19 }
 0x22a   :  { %v174_v31 = vpop.permute.xlu2 %173 }
 0x22b   :  { %v255_v33 = vsel %vm251_vm0, %v150_v25, %v174_v31 }
 0x22f   :  { %373 = vrot.lane.b32.xlu0 %v947_v32, %s777_s9 }
 0x230   :  { %221 = vrot.lane.b32.xlu2 %v150_v25, %s779_s19 }
 0x232   :  { %v186_v34 = vpop.permute.xlu2 %185 }
 0x233   :  { %v260_v35 = vsel %vm256_vm1, %v255_v33, %v186_v34 }
 0x237   :  { %367 = vrot.lane.b32.xlu0 %v956_v36, %s777_s9 }
 0x238   :  { %227 = vrot.lane.b32.xlu2 %v881_v22, %s773_s29 }
 0x239   :  { %v172_v37 = vpop.permute.xlu0 %171 }
 0x23a   :  { %v254_v38 = vsel %vm251_vm0, %v149_v24, %v172_v37  ;;  %v184_v39 = vpop.permute.xlu2 %183  ;;  %v104_v24 = vld [vmem:[%s1195_s3 + $0x18] sm:$0xff]  ;;  %v103_v37 = vld [vmem:[%s1195_s3 + $0x10] sm:$0xff] }
 0x23b   :  { %v259_v40 = vsel %vm256_vm1, %v254_v38, %v184_v39 }
 0x23f   :  { %361 = vrot.lane.b32.xlu0 %v967_v41, %s777_s9 }
 0x240   :  { %375 = vrot.lane.b32.xlu2 %v972_v42, %s777_s9 }
 0x241   :  { %v196_v43 = vpop.permute.xlu0 %195  ;;  %v198_v9 = vpop.permute.xlu1 %197 }
 0x242   :  { %v264_v44 = vsel %vm261_vm2, %v259_v40, %v196_v43  ;;  %v170_v45 = vpop.permute.xlu2 %169  ;;  %v265_v12 = vsel %vm261_vm2, %v260_v35, %v198_v9 }
 0x243   :  { %v253_v48 = vsel %vm251_vm0, %v883_v23, %v170_v45 }
 0x247   :  { %355 = vrot.lane.b32.xlu0 %v982_v46, %s777_s9 }
 0x248   :  { %371 = vrot.lane.b32.xlu2 %v987_v47, %s777_s9 }
 0x249   :  { %v182_v49 = vpop.permute.xlu0 %181 }
 0x24a   :  { %v258_v50 = vsel %vm256_vm1, %v253_v48, %v182_v49  ;;  %v208_v51 = vpop.permute.xlu2 %207 }
 0x24b   :  { %v269_v52 = vsel %vm266_vm3, %v264_v44, %v208_v51 }
 0x24f   :  { %349 = vrot.lane.b32.xlu0 %v1000_v53, %s777_s9 }
 0x250   :  { %365 = vrot.lane.b32.xlu2 %v1005_v54, %s777_s9 }
 0x251   :  { %v194_v55 = vpop.permute.xlu0 %193 }
 0x252   :  { %v263_v56 = vsel %vm261_vm2, %v258_v50, %v194_v55  ;;  %v168_v57 = vpop.permute.xlu2 %167 }
 0x253   :  { %v252_v33 = vsel %vm251_vm0, %v881_v22, %v168_v57  ;;  %v102_v22 = vld [vmem:[%s1195_s3 + $0x8] sm:$0xff] }
 0x258   :  { %359 = vrot.lane.b32.xlu2 %v1015_v58, %s777_s9 }
 0x259   :  { %v206_v59 = vpop.permute.xlu0 %205 }
 0x25a   :  { %v220_v60 = vpop.permute.xlu2 %219  ;;  %v268_v20 = vsel %vm266_vm3, %v263_v56, %v206_v59 }
 0x25b   :  { %v274_v14 = vsel %vm271_vm4, %v269_v52, %v220_v60  ;;  %v101_v52 = vld [vmem:[%s1195_s3] sm:$0xff] }
 0x260   :  { %353 = vrot.lane.b32.xlu2 %v1022_v61, %s777_s9 }
 0x261   :  { %v192_v62 = vpop.permute.xlu0 %191 }
 0x262   :  { %v180_v63 = vpop.permute.xlu2 %179 }
 0x263   :  { %v257_v39 = vsel %vm256_vm1, %v252_v33, %v180_v63 }
 0x264   :  { %v262_v48 = vsel %vm261_vm2, %v257_v39, %v192_v62  ;;  %v370_v62 = vpop.permute.xlu1 %369 }
 0x268   :  { %347 = vrot.lane.b32.xlu2 %v1029_v0, %s777_s9 }
 0x269   :  { %v244_v1 = vpop.permute.xlu0 %243 }
 0x26a   :  { %v232_v2 = vpop.permute.xlu2 %231 }
 0x26b   :  { %v279_v21 = vsel %vm276_vm5, %v274_v14, %v232_v2 }
 0x26c   :  { %v284_v38 = vsel %vm281_vm6, %v279_v21, %v244_v1 }
 0x26d   :  { %v288_v45 = vmul.f32 %v284_v38, %v103_v37 }
 0x271   :  { %v230_v3 = vpop.permute.xlu0 %229 }
 0x272   :  { %v218_v4 = vpop.permute.xlu2 %217 }
 0x273   :  { %v273_v23 = vsel %vm271_vm4, %v268_v20, %v218_v4  ;;  %v405_v4 = vmul.f32 %v370_v62, %v873_v18 }
 0x274   :  { %v278_v40 = vsel %vm276_vm5, %v273_v23, %v230_v3 }
 0x279   :  { %v242_v5 = vpop.permute.xlu0 %241 }
 0x27a   :  { %v204_v6 = vpop.permute.xlu2 %203  ;;  %v283_v44 = vsel %vm281_vm6, %v278_v40, %v242_v5 }
 0x27b   :  { %v267_v49 = vsel %vm266_vm3, %v262_v48, %v204_v6  ;;  %v287_v50 = vmul.f32 %v283_v44, %v102_v22 }
 0x281   :  { %v210_v7 = vpop.permute.xlu0 %209 }
 0x282   :  { %v216_v8 = vpop.permute.xlu2 %215  ;;  %v270_v13 = vsel %vm266_vm3, %v265_v12, %v210_v7 }
 0x283   :  { %v272_v51 = vsel %vm271_vm4, %v267_v49, %v216_v8 }
 0x289   :  { %v234_v10 = vpop.permute.xlu0 %233 }
 0x28a   :  { %v222_v11 = vpop.permute.xlu2 %221 }
 0x28b   :  { %v275_v15 = vsel %vm271_vm4, %v270_v13, %v222_v11 }
 0x28c   :  { %v280_v31 = vsel %vm276_vm5, %v275_v15, %v234_v10 }
 0x291   :  { %v246_v25 = vpop.permute.xlu0 %245 }
 0x292   :  { %v228_v34 = vpop.permute.xlu2 %227  ;;  %v285_v35 = vsel %vm281_vm6, %v280_v31, %v246_v25 }
 0x293   :  { %v289_v43 = vmul.f32 %v285_v35, %v104_v24  ;;  %v277_v55 = vsel %vm276_vm5, %v272_v51, %v228_v34 }
 0x295   :  { %306 = vmatpush.msra.mxu2 %v289_v43 }
 0x297   :  { %307 = vmatpush.msra.mxu2 %v288_v45 }
 0x299   :  { %v240_v56 = vpop.permute.xlu0 %239  ;;  %308 = vmatpush.msra.mxu2 %v287_v50 }
 0x29a   :  { %v282_v57 = vsel %vm281_vm6, %v277_v55, %v240_v56  ;;  %v376_v59 = vpop.permute.xlu2 %375 }
 0x29b   :  { %v286_v60 = vmul.f32 %v282_v57, %v101_v52  ;;  %v408_v1 = vmul.f32 %v376_v59, %v877_v19 }
 0x29d   :  { %309 = vmatpush.msra.mxu2 %v286_v60 }
 0x29e   :  { %670 = vmatmul.msk.f32.vlgmr.msra.gmra.mxu2 %vm256_vm1, %v873_v18 }
 0x29f   :  { %496 = vmatpush.msrb.mxu2 %v972_v42  ;;  %v364_v42 = vpop.permute.xlu1 %363 }
 0x2a1   :  { %v374_v63 = vpop.permute.xlu0 %373  ;;  %497 = vmatpush.msrb.mxu2 %v947_v32 }
 0x2a2   :  { %v407_v2 = vmul.f32 %v374_v63, %v873_v18  ;;  %v372_v3 = vpop.permute.xlu2 %371 }
 0x2a3   :  { %v406_v5 = vmul.f32 %v372_v3, %v877_v19  ;;  %498 = vmatpush.msrb.mxu2 %v987_v47  ;;  %v50_v3 = vld [vmem:[%s1193_s1 + $0xd8] sm:$0xff] }
 0x2a4   :  { %v691_v6 = vpack.i.bf16 %v407_v2, %v408_v1  ;;  %v54_v1 = vld [vmem:[%s1193_s1 + $0xf8] sm:$0xff]  ;;  %v52_v2 = vld [vmem:[%s1193_s1 + $0xe8] sm:$0xff] }
 0x2a5   :  { %v696_v7 = vpack.i.bf16 %v405_v4, %v406_v5  ;;  %499 = vmatpush.msrb.mxu2 %v888_v26  ;;  %78 = vmatpush.msra.mxu1 %v54_v1 }
 0x2a6   :  { %671 = vmatmul.msk.f32.gmra.mxu2 %vm256_vm1, %v877_v19  ;;  %692 = vrot.lane.b32.xlu2 %v691_v6, %s777_s9  ;;  %v105_v6 = vld [vmem:[%s1195_s3 + $0x20] sm:$0xff] }
 0x2a7   :  { %697 = vrot.lane.b32.xlu1 %v696_v7, %s777_s9  ;;  %500 = vmatpush.msrb.mxu2 %v956_v36  ;;  %v402_v36 = vmul.f32 %v364_v42, %v877_v19  ;;  %v358_v12 = vpop.permute.xlu1 %357  ;;  %v48_v7 = vld [vmem:[%s1193_s1 + $0xc8] sm:$0xff] }
 0x2a8   :  { %79 = vmatpush.msra.mxu1 %v52_v2 }
 0x2a9   :  { %v368_v32 = vpop.permute.xlu0 %367  ;;  %501 = vmatpush.msrb.mxu2 %v1005_v54 }
 0x2aa   :  { %v404_v8 = vmul.f32 %v368_v32, %v877_v19  ;;  %v366_v47 = vpop.permute.xlu2 %365  ;;  %80 = vmatpush.msra.mxu1 %v50_v3 }
 0x2ab   :  { %v403_v9 = vmul.f32 %v366_v47, %v873_v18  ;;  %502 = vmatpush.msrb.mxu2 %v898_v27 }
 0x2ac   :  { %81 = vmatpush.msra.mxu1 %v48_v7 }
 0x2ad   :  { %v701_v26 = vpack.i.bf16 %v403_v9, %v404_v8  ;;  %503 = vmatpush.msrb.mxu2 %v967_v41  ;;  %v46_v8 = vld [vmem:[%s1193_s1 + $0xb8] sm:$0xff]  ;;  %v44_v9 = vld [vmem:[%s1193_s1 + $0xa8] sm:$0xff] }
 0x2ae   :  { %82 = vmatpush.msra.mxu1 %v46_v8 }
 0x2af   :  { %702 = vrot.lane.b32.xlu1 %v701_v26, %s777_s9  ;;  %504 = vmatpush.msrb.mxu2 %v1015_v58  ;;  %v42_v26 = vld [vmem:[%s1193_s1 + $0x98] sm:$0xff] }
 0x2b0   :  { %83 = vmatpush.msra.mxu1 %v44_v9 }
 0x2b1   :  { %v362_v10 = vpop.permute.xlu0 %361  ;;  %505 = vmatpush.msrb.mxu2 %v907_v28  ;;  %v399_v28 = vmul.f32 %v358_v12, %v873_v18 }
 0x2b2   :  { %v401_v54 = vmul.f32 %v362_v10, %v873_v18  ;;  %v360_v11 = vpop.permute.xlu2 %359  ;;  %v106_v10 = vld [vmem:[%s1195_s3 + $0x28] sm:$0xff]  ;;  %84 = vmatpush.msra.mxu1 %v42_v26 }
 0x2b3   :  { %506 = vmatpush.msrb.mxu2 %v982_v46  ;;  %v400_v27 = vmul.f32 %v360_v11, %v877_v19  ;;  %v352_v46 = vpop.permute.xlu1 %351 }
 0x2b4   :  { %v706_v13 = vpack.i.bf16 %v401_v54, %v402_v36  ;;  %v396_v50 = vmul.f32 %v352_v46, %v877_v19  ;;  %v40_v36 = vld [vmem:[%s1193_s1 + $0x88] sm:$0xff] }
 0x2b5   :  { %507 = vmatpush.msrb.mxu2 %v1022_v61  ;;  %v711_v58 = vpack.i.bf16 %v399_v28, %v400_v27  ;;  %85 = vmatpush.msra.mxu1 %v40_v36  ;;  %v38_v27 = vld [vmem:[%s1193_s1 + $0x78] sm:$0xff] }
 0x2b7   :  { %707 = vrot.lane.b32.xlu1 %v706_v13, %s777_s9  ;;  %508 = vmatpush.msrb.mxu2 %v917_v29 }
 0x2b8   :  { %86 = vmatpush.msra.mxu1 %v38_v27 }
 0x2b9   :  { %509 = vmatpush.msrb.mxu2 %v1000_v53  ;;  %v356_v14 = vpop.permute.xlu0 %355 }
 0x2ba   :  { %v354_v41 = vpop.permute.xlu2 %353  ;;  %v398_v61 = vmul.f32 %v356_v14, %v877_v19 }
 0x2bb   :  { %510 = vmatpush.msrb.mxu2 %v1029_v0  ;;  %v397_v29 = vmul.f32 %v354_v41, %v873_v18  ;;  %v346_v53 = vpop.permute.xlu1 %345 }
 0x2bc   :  { %v393_v0 = vmul.f32 %v346_v53, %v873_v18  ;;  %v26_v53 = vld [vmem:[%s1193_s1 + $0x18] sm:$0xff] }
 0x2bd   :  { %511 = vmatpush.msrb.mxu2 %v926_v30  ;;  %v716_v15 = vpack.i.bf16 %v397_v29, %v398_v61  ;;  %v34_v61 = vld [vmem:[%s1193_s1 + $0x58] sm:$0xff]  ;;  %v32_v29 = vld [vmem:[%s1193_s1 + $0x48] sm:$0xff] }
 0x2bf   :  { %712 = vrot.lane.b32.xlu1 %v711_v58, %s777_s9  ;;  %v36_v58 = vld [vmem:[%s1193_s1 + $0x68] sm:$0xff] }
 0x2c0   :  { %87 = vmatpush.msra.mxu1 %v36_v58 }
 0x2c1   :  { %v350_v45 = vpop.permute.xlu0 %349 }
 0x2c2   :  { %v348_v20 = vpop.permute.xlu2 %347  ;;  %v395_v48 = vmul.f32 %v350_v45, %v873_v18  ;;  %88 = vmatpush.msra.mxu1 %v34_v61 }
 0x2c3   :  { %v394_v21 = vmul.f32 %v348_v20, %v877_v19  ;;  %v28_v20 = vld [vmem:[%s1193_s1 + $0x28] sm:$0xff] }
 0x2c4   :  { %v721_v52 = vpack.i.bf16 %v395_v48, %v396_v50  ;;  %89 = vmatpush.msra.mxu1 %v32_v29 }
 0x2c5   :  { %v726_v23 = vpack.i.bf16 %v393_v0, %v394_v21  ;;  %v24_v21 = vld [vmem:[%s1193_s1 + $0x8] sm:$0xff]  ;;  %v552_v0 = vld [vmem:[%s1194_s2 + $0x18] sm:$0xff] }
 0x2c6   :  { %571 = vmatpush.msrb.mxu0 %v552_v0 }
 0x2c7   :  { %717 = vrot.lane.b32.xlu1 %v716_v15, %s777_s9  ;;  %v30_v15 = vld [vmem:[%s1193_s1 + $0x38] sm:$0xff] }
 0x2c8   :  { %90 = vmatpush.msra.mxu1 %v30_v15 }
 0x2ca   :  { %91 = vmatpush.msra.mxu1 %v28_v20 }
 0x2cc   :  { %92 = vmatpush.msra.mxu1 %v26_v53 }
 0x2ce   :  { %93 = vmatpush.msra.mxu1 %v24_v21 }
 0x2cf   :  { %727 = vrot.lane.b32.xlu1 %v726_v23, %s777_s9  ;;  %94 = vmatmul.f32.vlgmr.msra.gmra.mxu1 %v864_v16  ;;  %v551_v23 = vld [vmem:[%s1194_s2 + $0x10] sm:$0xff]  ;;  %v549_v16 = vld [vmem:[%s1194_s2] sm:$0xff] }
 0x2d0   :  { %676 = vmatpush.msrb.mxu1 %v552_v0  ;;  %572 = vmatpush.msrb.mxu0 %v551_v23 }
 0x2d2   :  { %677 = vmatpush.msrb.mxu1 %v551_v23 }
 0x2d7   :  { %97 = vmatmul.f32.gmra.mxu1 %v870_v17 }
 0x300   :  { %v693_v30 = vpop.permute.xlu2 %692 }
 0x301   :  { %v694_v24 = vunpack.i.l.bf16 %v693_v30  ;;  %v695_v25 = vunpack.i.h.bf16 %v693_v30  ;;  %v550_v30 = vld [vmem:[%s1194_s2 + $0x8] sm:$0xff]  ;;  %s780_s2 = smov [#allocation2]  }
 0x302   :  { %573 = vmatpush.msrb.mxu0 %v550_v30  ;;  %678 = vmatpush.msrb.mxu1 %v550_v30  ;;  %s656_s4 = sshll.u32 %s780_s2, 4  ;;  %s657_s4 = int_to_ptr.vmem [resolvable:$true] %s656_s4 }
 0x303   :  { %473 = vmatpush.msra.mxu3 %v694_v24 }
 0x304   :  { %574 = vmatpush.msrb.mxu0 %v549_v16  ;;  %679 = vmatpush.msrb.mxu1 %v549_v16 }
 0x305   :  { %474 = vmatpush.msra.mxu3 %v695_v25 }
 0x319   :  { %v698_v31 = vpop.permute.xlu1 %697 }
 0x31a   :  { %v699_v33 = vunpack.i.l.bf16 %v698_v31  ;;  %v700_v34 = vunpack.i.h.bf16 %v698_v31 }
 0x31c   :  { %475 = vmatpush.msra.mxu3 %v699_v33 }
 0x31e   :  { %476 = vmatpush.msra.mxu3 %v700_v34 }
 0x321   :  { %v703_v35 = vpop.permute.xlu1 %702  ;;  %v311_v37 = vpop.f32.mrf.mxu2 }
 0x322   :  { %317 = vmax.xlane.f32.xlu0 %v311_v37  ;;  %v704_v38 = vunpack.i.l.bf16 %v703_v35  ;;  %v705_v39 = vunpack.i.h.bf16 %v703_v35 }
 0x324   :  { %477 = vmatpush.msra.mxu3 %v704_v38 }
 0x326   :  { %478 = vmatpush.msra.mxu3 %v705_v39 }
 0x329   :  { %v708_v40 = vpop.permute.xlu1 %707  ;;  %v314_v43 = vpop.f32.mrf.mxu2 }
 0x32a   :  { %319 = vmax.xlane.f32.xlu2 %v314_v43  ;;  %v709_v44 = vunpack.i.l.bf16 %v708_v40  ;;  %v710_v22 = vunpack.i.h.bf16 %v708_v40 }
 0x32c   :  { %479 = vmatpush.msra.mxu3 %v709_v44 }
 0x32e   :  { %480 = vmatpush.msra.mxu3 %v710_v22 }
 0x331   :  { %v713_v49 = vpop.permute.xlu1 %712 }
 0x332   :  { %v714_v51 = vunpack.i.l.bf16 %v713_v49  ;;  %v715_v55 = vunpack.i.h.bf16 %v713_v49 }
 0x334   :  { %481 = vmatpush.msra.mxu3 %v714_v51 }
 0x336   :  { %482 = vmatpush.msra.mxu3 %v715_v55  ;;  %722 = vrot.lane.b32.xlu0 %v721_v52, %s777_s9 }
 0x339   :  { %v718_v56 = vpop.permute.xlu1 %717 }
 0x33a   :  { %v719_v57 = vunpack.i.l.bf16 %v718_v56  ;;  %v720_v59 = vunpack.i.h.bf16 %v718_v56 }
 0x33c   :  { %483 = vmatpush.msra.mxu3 %v719_v57 }
 0x33e   :  { %484 = vmatpush.msra.mxu3 %v720_v59 }
 0x341   :  { %v728_v28 = vpop.permute.xlu1 %727 }
 0x342   :  { %v729_v46 = vunpack.i.l.bf16 %v728_v28  ;;  %v730_v14 = vunpack.i.h.bf16 %v728_v28 }
 0x395   :  { %v318_v60 = vpop.xlane.xlu0 %317 }
 0x396   :  { %v321_v62 = vsub.f32 %v311_v37, %v318_v60 }
 0x398   :  { %v323_v63 = vmul.f32 1.442695, %v321_v62 }
 0x39a   :  { %731 = vpow2.f32 %v323_v63  ;;  %v95_v63 = vpop.f32.mrf.mxu1 }
 0x39d   :  { %v320_v4 = vpop.xlane.xlu2 %319 }
 0x39e   :  { %v322_v5 = vsub.f32 %v314_v43, %v320_v4 }
 0x3a0   :  { %v732_v32 = vpop.eup %731  ;;  %v325_v42 = vmul.f32 1.442695, %v322_v5 }
 0x3a1   :  { %v327_v47 = vmul.f32 %v732_v32, %v105_v6 }
 0x3a2   :  { %733 = vpow2.f32 %v325_v42  ;;  %v98_v1 = vpop.f32.mrf.mxu1 }
 0x3a3   :  { %512 = vmatmul.f32.vlgmr.msrb.gmra.mxu2 %v327_v47 }
 0x3a8   :  { %v734_v54 = vpop.eup %733  ;;  %v723_v11 = vpop.permute.xlu0 %722 }
 0x3a9   :  { %v724_v12 = vunpack.i.l.bf16 %v723_v11  ;;  %v328_v13 = vmul.f32 %v734_v54, %v106_v10  ;;  %v725_v41 = vunpack.i.h.bf16 %v723_v11 }
 0x3ab   :  { %485 = vmatpush.msra.mxu3 %v724_v12  ;;  %515 = vmatmul.f32.gmra.mxu2 %v328_v13 }
 0x3ad   :  { %486 = vmatpush.msra.mxu3 %v725_v41 }
 0x3af   :  { %487 = vmatpush.msra.mxu3 %v729_v46 }
 0x3b1   :  { %488 = vmatpush.msra.mxu3 %v730_v14 }
 0x3b2   :  { %489 = vmatmul.f32.vlgmr.msra.gmra.mxu3 %v327_v47 }
 0x3ba   :  { %492 = vmatmul.f32.gmra.mxu3 %v328_v13 }
 0x426   :  { %v513_v24 = vpop.f32.mrf.mxu2 }
 0x427   :  { %735 = vrcp.f32 %v513_v24  ;;  %v530_v35 = vand.u32 2147483648, %v513_v24  ;;  %v528_v38 = vand.u32 2147483647, %v513_v24  ;;  %vm524_vm8 = vweird.f32 %v513_v24 }
 0x429   :  { %v531_v44 = vor.u32 1.1754944e-38, %v530_v35  ;;  %vm529_vm10 = vcmp.eq.f32.partialorder %v528_v38, 8.507059e+37 }
 0x42d   :  { %v736_v25 = vpop.eup %735 }
 0x42e   :  { %v520_v31 = vmul.f32 %v736_v25, %v513_v24  ;;  %v516_v33 = vpop.f32.mrf.mxu2  ;;  %vm525_vm7 = vweird.f32 %v736_v25 }
 0x42f   :  { %737 = vrcp.f32 %v516_v33  ;;  %vm526_vm9 = vmor %vm524_vm8, %vm525_vm7  ;;  %v544_v50 = vand.u32 2147483648, %v516_v33  ;;  %v542_v52 = vand.u32 2147483647, %v516_v33  ;;  %vm538_vm12 = vweird.f32 %v516_v33 }
 0x430   :  { %v521_v34 = vsub.f32 1.0, %v520_v31 }
 0x431   :  { %v545_v56 = vor.u32 1.1754944e-38, %v544_v50  ;;  %vm543_vm14 = vcmp.eq.f32.partialorder %v542_v52, 8.507059e+37 }
 0x432   :  { %v522_v37 = vmul.f32 %v736_v25, %v521_v34 }
 0x434   :  { %v523_v39 = vadd.f32 %v736_v25, %v522_v37 }
 0x435   :  { %v738_v40 = vpop.eup %737  ;;  %v490_v43 = vpop.f32.mrf.mxu3 }
 0x436   :  { %v534_v22 = vmul.f32 %v738_v40, %v516_v33  ;;  %v527_v45 = vsel %vm526_vm9, %v736_v25, %v523_v39  ;;  %vm539_vm11 = vweird.f32 %v738_v40 }
 0x437   :  { %v532_v17 = vsel %vm529_vm10, %v531_v44, %v527_v45  ;;  %vm540_vm13 = vmor %vm538_vm12, %vm539_vm11 }
 0x438   :  { %v535_v48 = vsub.f32 1.0, %v534_v22  ;;  %v547_v49 = vmul.f32 %v532_v17, %v490_v43 }
 0x43a   :  { %v536_v51 = vmul.f32 %v738_v40, %v535_v48  ;;  %672 = vmatmul.msk.f32.vlgmr.msrb.gmra.mxu0 %vm256_vm1, %v547_v49 }
 0x43c   :  { %v537_v55 = vadd.f32 %v738_v40, %v536_v51 }
 0x43d   :  { %v493_v59 = vpop.f32.mrf.mxu3 }
 0x43e   :  { %v541_v57 = vsel %vm540_vm13, %v738_v40, %v537_v55 }
 0x43f   :  { %v546_v60 = vsel %vm543_vm14, %v545_v56, %v541_v57 }
 0x440   :  { %v548_v62 = vmul.f32 %v546_v60, %v493_v59 }
 0x442   :  { %673 = vmatmul.msk.f32.vlgmr.msrb.gmra.mxu1 %vm256_vm1, %v548_v62 }
 0x4b7   :  { %v576_v2 = vpop.f32.mrf.mxu0 }
 0x4b8   :  { %584 = vrot.lane.b32.xlu2 %v576_v2, %s773_s29 }
 0x4bf   :  { %v579_v3 = vpop.f32.mrf.mxu1 }
 0x4c0   :  { %586 = vrot.lane.b32.xlu1 %v579_v3, %s773_s29 }
 0x512   :  { %v585_v4 = vpop.permute.xlu2 %584 }
 0x513   :  { %v591_v5 = vadd.f32 %v585_v4, %v95_v63  ;;  %v590_v30 = vadd.f32 %v585_v4, %v873_v18 }
 0x515   :  { %v674_v6 = vmul.f32 -1.442695, %v591_v5 }
 0x517   :  { %739 = vpow2.f32 %v674_v6 }
 0x51d   :  { %v740_v7 = vpop.eup %739 }
 0x51e   :  { %v600_v32 = vadd.f32 1.0, %v740_v7 }
 0x520   :  { %741 = vrcp.f32 %v600_v32  ;;  %v613_v9 = vand.u32 2147483648, %v600_v32  ;;  %v611_v10 = vand.u32 2147483647, %v600_v32  ;;  %vm607_vm0 = vweird.f32 %v600_v32 }
 0x522   :  { %v614_v54 = vor.u32 1.1754944e-38, %v613_v9  ;;  %vm612_vm3 = vcmp.eq.f32.partialorder %v611_v10, 8.507059e+37 }
 0x526   :  { %v742_v42 = vpop.eup %741 }
 0x527   :  { %v603_v8 = vmul.f32 %v742_v42, %v600_v32  ;;  %vm608_vm15 = vweird.f32 %v742_v42 }
 0x528   :  { %vm609_vm2 = vmor %vm607_vm0, %vm608_vm15 }
 0x529   :  { %v604_v47 = vsub.f32 1.0, %v603_v8 }
 0x52b   :  { %v605_v26 = vmul.f32 %v742_v42, %v604_v47 }
 0x52d   :  { %v606_v36 = vadd.f32 %v742_v42, %v605_v26 }
 0x52f   :  { %v610_v11 = vsel %vm609_vm2, %v742_v42, %v606_v36 }
 0x530   :  { %v615_v12 = vsel %vm612_vm3, %v614_v54, %v610_v11 }
 0x531   :  { %634 = vrot.lane.b32.xlu1 %v615_v12, %s773_s29 }
 0x532   :  { %v587_v13 = vpop.permute.xlu1 %586 }
 0x533   :  { %v593_v27 = vadd.f32 %v587_v13, %v98_v1  ;;  %v592_v25 = vadd.f32 %v587_v13, %v877_v19 }
 0x535   :  { %v675_v28 = vmul.f32 -1.442695, %v593_v27 }
 0x537   :  { %743 = vpow2.f32 %v675_v28 }
 0x53d   :  { %v744_v41 = vpop.eup %743 }
 0x53e   :  { %v601_v58 = vadd.f32 1.0, %v744_v41 }
 0x540   :  { %745 = vrcp.f32 %v601_v58  ;;  %v628_v29 = vand.u32 2147483648, %v601_v58  ;;  %v626_v20 = vand.u32 2147483647, %v601_v58  ;;  %vm622_vm5 = vweird.f32 %v601_v58 }
 0x542   :  { %v629_v21 = vor.u32 1.1754944e-38, %v628_v29  ;;  %vm627_vm7 = vcmp.eq.f32.partialorder %v626_v20, 8.507059e+37 }
 0x546   :  { %v746_v46 = vpop.eup %745 }
 0x547   :  { %v618_v14 = vmul.f32 %v746_v46, %v601_v58  ;;  %vm623_vm4 = vweird.f32 %v746_v46 }
 0x548   :  { %vm624_vm6 = vmor %vm622_vm5, %vm623_vm4 }
 0x549   :  { %v619_v61 = vsub.f32 1.0, %v618_v14 }
 0x54b   :  { %v620_v15 = vmul.f32 %v746_v46, %v619_v61 }
 0x54d   :  { %v621_v53 = vadd.f32 %v746_v46, %v620_v15 }
 0x54f   :  { %v625_v0 = vsel %vm624_vm6, %v746_v46, %v621_v53 }
 0x550   :  { %v630_v23 = vsel %vm627_vm7, %v629_v21, %v625_v0 }
 0x551   :  { %636 = vrot.lane.b32.xlu0 %v630_v23, %s773_s29  ;;  %s658_s29 = sshll.u32 %s1197_s5, 4  ;;  %s659_s29 = int_to_ptr.hbm [resolvable:$true] %s658_s29 }
 0x5a3   :  { %v635_v16 = vpop.permute.xlu1 %634 }
 0x5a4   :  { %v640_v24 = vmul.f32 %v635_v16, %v590_v30 }
 0x5a6   :  { %644 = vrot.lane.b32.xlu1 %v640_v24, %s776_s8 }
 0x5c3   :  { %v637_v31 = vpop.permute.xlu0 %636 }
 0x5c4   :  { %v641_v33 = vmul.f32 %v637_v31, %v592_v25 }
 0x5c6   :  { %646 = vrot.lane.b32.xlu0 %v641_v33, %s776_s8 }
 0x618   :  { %v645_v34 = vpop.permute.xlu1 %644 }
 0x619   :  { %650 = vst.msk [vmem:[#allocation2] sm:$0xff] %vm256_vm1, %v645_v34 }
 0x638   :  { %v647_v18 = vpop.permute.xlu0 %646 }
 0x639   :  { %651 = vst.msk [vmem:[#allocation2 + $0x8] sm:$0xff] %vm256_vm1, %v647_v18 }
 0x63a   :  { %664 = dma.vmem_to_hbm [thread:$0]  %s657_s4, 256, %s659_s29, [#allocation3], %s781_s21, %s781_s21, %s782_s22  }
 0x63b   :  { %771 = dma.done.wait [#allocation3], 256  }
 0x63c   :  { %772 = vsyncadd [#allocation3], 4294967040 }
 0x63d   :  { %669 = vsyncpa [#allocation3], 1 }

</bundles_post_ra>
